<compile_context>
chip_gen: v5e
topology: v5e:2x2
jax: 0.10.0
libtpu: 0.0.40
codegen_flags: <defaults>
</compile_context>

<pallas_src>
import jax
import jax.numpy as jnp
from jax.experimental import pallas as pl
from jax.experimental.pallas import tpu as pltpu


# ----------------------------- small helpers --------------------------------

def _round_up(n, m):
    return ((n + m - 1) // m) * m


def _cdiv(a, b):
    return -(-a // b)


def _pad_to(a, axis, target):
    pad = target - a.shape[axis]
    if pad == 0:
        return a
    widths = [(0, 0)] * a.ndim
    widths[axis] = (0, pad)
    return jnp.pad(a, widths)


def _cast(a, dtype):
    # Skip the cast (an extra HBM read+write as a separate XLA op) when the
    # caller already provides pre-cast arrays.
    return a if a.dtype == jnp.dtype(dtype) else a.astype(dtype)


def _pick_row_tile(M, target):
    """16-aligned row tile ~target that minimizes padded rows.

    Returns (tm, Mp) with Mp = tm * n_tiles >= M (e.g. M=300, target=512
    -> tm=304, Mp=304 instead of padding to 512)."""
    if M <= target:
        tm = _round_up(M, 16)
        return tm, tm
    n = _cdiv(M, target)
    tm = _round_up(_cdiv(M, n), 16)
    return tm, tm * n


def _vmem_budget():
    """(cap for vmem_limit_bytes, budget for keeping weights resident)."""
    try:
        vmem_cap = int(pltpu.get_tpu_info().vmem_capacity_bytes)
    except Exception:
        vmem_cap = 64 << 20  # assume the smallest (v7x) if query unavailable
    small = vmem_cap <= (64 << 20)
    cap = (48 << 20) if small else (100 << 20)
    return cap, small


# ------------------------------- kernels -------------------------------------

def _ffn_resident_kernel(x_ref, w1t_ref, w2t_ref, o_ref):
    # Single reduction step: both weight slabs are fully VMEM-resident.
    h = jnp.dot(x_ref[...], w1t_ref[...], preferred_element_type=jnp.float32)
    h = jnp.maximum(h, 0.0).astype(w2t_ref.dtype)   # relu == relu-after-downcast
    o_ref[...] = jnp.dot(h, w2t_ref[...],
                         preferred_element_type=jnp.float32).astype(o_ref.dtype)


def _ffn_stream_kernel(x_ref, w1t_ref, w2t_ref, o_ref, acc_ref):
    k = pl.program_id(1)

    @pl.when(k == 0)
    def _():
        acc_ref[...] = jnp.zeros_like(acc_ref)

    h = jnp.dot(x_ref[...], w1t_ref[...], preferred_element_type=jnp.float32)
    h = jnp.maximum(h, 0.0).astype(w2t_ref.dtype)
    acc_ref[...] += jnp.dot(h, w2t_ref[...], preferred_element_type=jnp.float32)

    @pl.when(k == pl.num_programs(1) - 1)
    def _():
        o_ref[...] = acc_ref[...].astype(o_ref.dtype)


# ------------------------------- wrapper -------------------------------------

def feedforward(x, w1t, w2t, *, compute_dtype=jnp.bfloat16):
    """x: [B, S, d_model]; w1t: [d_model, dim_ff] (=W1.T); w2t: [dim_ff, d_model] (=W2.T).

    w1t / w2t may be passed pre-cast to `compute_dtype` (and pre-padded to
    multiples of 128) to avoid per-call cast/pad HBM traffic."""
    B, S, d_model = x.shape
    dm_w, dim_ff = w1t.shape
    assert dm_w == d_model and w2t.shape == (dim_ff, d_model)

    out_dtype = x.dtype
    M = B * S
    bytes_in = jnp.dtype(compute_dtype).itemsize
    bytes_out = jnp.dtype(out_dtype).itemsize

    Dp = _round_up(d_model, 128)          # lane-dense feature / output dim
    F_aligned = _round_up(dim_ff, 128)

    vmem_cap_limit, small_vmem = _vmem_budget()

    # ---------------- resident-weight configuration (preferred) --------------
    tm_res, Mp_res = _pick_row_tile(M, 512)
    resident_est = (2 * tm_res * Dp * bytes_in          # x, double-buffered
                    + 2 * Dp * F_aligned * bytes_in     # W1^T (conservative 2x)
                    + 2 * F_aligned * Dp * bytes_in     # W2^T (conservative 2x)
                    + 2 * tm_res * Dp * bytes_out)      # output, double-buffered
    use_resident = resident_est <= int(0.8 * vmem_cap_limit)

    if use_resident:
        tm_eff, Mp, Fp = tm_res, Mp_res, F_aligned
        grid = (Mp // tm_eff,)
        in_specs = [
            pl.BlockSpec((tm_eff, Dp), lambda i: (i, 0)),   # x row tile
            pl.BlockSpec((Dp, Fp), lambda i: (0, 0)),       # W1^T: fetched once
            pl.BlockSpec((Fp, Dp), lambda i: (0, 0)),       # W2^T: fetched once
        ]
        out_specs = pl.BlockSpec((tm_eff, Dp), lambda i: (i, 0))
        scratch_shapes = []
        kernel = _ffn_resident_kernel
        dim_sem = ("parallel",)
        vmem_est = resident_est
        bytes_accessed = (Mp * Dp * bytes_in
                          + 2 * Dp * Fp * bytes_in
                          + Mp * Dp * bytes_out)
    else:
        # ------------------- streaming fallback (big dim_ff) -----------------
        tm_target = 640 if small_vmem else 1024
        tk_target = 512

        def stream_cfg(tm_t, tk_t):
            tm_s, Mp_s = _pick_row_tile(M, tm_t)
            n_k = _cdiv(F_aligned, tk_t)
            tk_s = _round_up(_cdiv(F_aligned, n_k), 128)
            Fp_s = tk_s * n_k
            est = (2 * tm_s * Dp * bytes_in            # x
                   + 3 * Dp * tk_s * bytes_in          # W1^T slab, Buffered(3)
                   + 3 * tk_s * Dp * bytes_in          # W2^T slab, Buffered(3)
                   + 2 * tm_s * Dp * bytes_out         # output
                   + tm_s * Dp * 4)                    # f32 accumulator
            return tm_s, Mp_s, tk_s, Fp_s, est

        for tm_t, tk_t in ((tm_target, tk_target),
                           (max(tm_target // 2, 256), tk_target),
                           (max(tm_target // 2, 256), 256),
                           (256, 256), (128, 128)):
            tm_eff, Mp, tk_eff, Fp, vmem_est = stream_cfg(tm_t, tk_t)
            if vmem_est <= int(0.9 * vmem_cap_limit):
                break

        grid = (Mp // tm_eff, Fp // tk_eff)
        in_specs = [
            pl.BlockSpec((tm_eff, Dp), lambda i, k: (i, 0)),
            pl.BlockSpec((Dp, tk_eff), lambda i, k: (0, k),
                         pipeline_mode=pl.Buffered(3)),
            pl.BlockSpec((tk_eff, Dp), lambda i, k: (k, 0),
                         pipeline_mode=pl.Buffered(3)),
        ]
        out_specs = pl.BlockSpec((tm_eff, Dp), lambda i, k: (i, 0))
        scratch_shapes = [pltpu.VMEM((tm_eff, Dp), jnp.float32)]
        kernel = _ffn_stream_kernel
        dim_sem = ("parallel", "arbitrary")
        bytes_accessed = (Mp * Dp * bytes_in
                          + grid[0] * 2 * Dp * Fp * bytes_in   # weights re-streamed per row tile
                          + Mp * Dp * bytes_out)

    # ---- pad + cast in the wrapper (zero padding is exact under relu/matmul;
    #      casts/pads are skipped when the caller already provides them) ------
    x2d = _pad_to(_pad_to(_cast(x.reshape(M, d_model), compute_dtype), 1, Dp), 0, Mp)
    w1t_p = _pad_to(_pad_to(_cast(w1t, compute_dtype), 0, Dp), 1, Fp)
    w2t_p = _pad_to(_pad_to(_cast(w2t, compute_dtype), 0, Fp), 1, Dp)

    cost = pl.CostEstimate(
        flops=2 * 2 * Mp * Dp * Fp,
        transcendentals=0,
        bytes_accessed=int(bytes_accessed),
    )

    vmem_limit = int(min(max(2 * vmem_est, 32 * 1024 * 1024), vmem_cap_limit))

    out2d = pl.pallas_call(
        kernel,
        out_shape=jax.ShapeDtypeStruct((Mp, Dp), out_dtype),
        grid_spec=pltpu.PrefetchScalarGridSpec(
            num_scalar_prefetch=0,
            grid=grid,
            in_specs=in_specs,
            out_specs=out_specs,
            scratch_shapes=scratch_shapes,
        ),
        compiler_params=pltpu.CompilerParams(
            dimension_semantics=dim_sem,
            vmem_limit_bytes=vmem_limit),
        cost_estimate=cost,
    )(x2d, w1t_p, w2t_p)

    return out2d[:M, :d_model].reshape(B, S, d_model)


# ------------------------------ param init -----------------------------------

def init_params(key, d_model, dim_ff, dtype=jnp.float32):
    # Mimics nn.Linear's uniform(-1/sqrt(fan_in), 1/sqrt(fan_in)) init.
    k1, k2 = jax.random.split(key)
    b1 = 1.0 / (d_model ** 0.5)
    b2 = 1.0 / (dim_ff ** 0.5)
    w1 = jax.random.uniform(k1, (dim_ff, d_model), dtype, -b1, b1)  # linear1.weight
    w2 = jax.random.uniform(k2, (d_model, dim_ff), dtype, -b2, b2)  # linear2.weight
    return w1, w2


if __name__ == "__main__":
    B, S, d_model, dim_ff = 2, 8, 32, 64

    key = jax.random.PRNGKey(0)
    kx, kp = jax.random.split(key)
    x = jax.random.normal(kx, (B, S, d_model), jnp.float32)
    w1, w2 = init_params(kp, d_model, dim_ff)

    y = feedforward(x, w1.T, w2.T)
    y = jax.block_until_ready(y)

    # Reference in plain JAX f32 (eval-mode dropout == identity).  Kernel computes
    # in bf16 with f32 accumulation, so tolerance is relaxed accordingly.
    ref = jnp.maximum(x @ w1.T, 0.0) @ w2.T
    assert y.shape == (B, S, d_model)
    assert jnp.allclose(y, ref, atol=2e-2, rtol=2e-2), float(jnp.abs(y - ref).max())

    print("KERNEL_OK")
</pallas_src>

<mosaic_0001>
module attributes {stable_mosaic.version = 11 : i64} {
  func.func @_ffn_resident_kernel(%arg0: i32, %arg1: memref<16x128xbf16, #tpu.memory_space<vmem>>, %arg2: memref<128x128xbf16, #tpu.memory_space<vmem>>, %arg3: memref<128x128xbf16, #tpu.memory_space<vmem>>, %arg4: memref<16x128xf32, #tpu.memory_space<vmem>>) attributes {dimension_semantics = [#tpu.dimension_semantics<parallel>], iteration_bounds = array<i64: 1>, scalar_prefetch = 0 : i64, scratch_operands = 0 : i64, tpu.core_type = #tpu.core_type<tc>, window_params = [{transform_indices = @transform_0, window_bounds = array<i64: 16, 128>}, {pipeline_mode = #tpu.pipeline_mode<synchronous>, transform_indices = @transform_1, window_bounds = array<i64: 128, 128>}, {pipeline_mode = #tpu.pipeline_mode<synchronous>, transform_indices = @transform_2, window_bounds = array<i64: 128, 128>}, {transform_indices = @transform_3, window_bounds = array<i64: 16, 128>}]} {
    %c0 = arith.constant 0 : index
    %c0_0 = arith.constant 0 : index
    %0 = vector.load %arg1[%c0, %c0_0] : memref<16x128xbf16, #tpu.memory_space<vmem>>, vector<16x128xbf16>
    %c0_1 = arith.constant 0 : index
    %c0_2 = arith.constant 0 : index
    %1 = vector.load %arg2[%c0_1, %c0_2] : memref<128x128xbf16, #tpu.memory_space<vmem>>, vector<128x128xbf16>
    %cst = arith.constant dense<0.000000e+00> : vector<16x128xf32>
    %2 = tpu.matmul %0, %1, %cst {dimension_numbers = #tpu.dot_dimension_numbers<[1], [0], [0], [1], [0, 0, 1, 1], [], []>} : vector<16x128xbf16>, vector<128x128xbf16>, vector<16x128xf32> -> vector<16x128xf32>
    %cst_3 = arith.constant 0.000000e+00 : f32
    %3 = vector.broadcast %cst_3 : f32 to vector<16x128xf32>
    %4 = arith.maximumf %2, %3 : vector<16x128xf32>
    %5 = arith.truncf %4 : vector<16x128xf32> to vector<16x128xbf16>
    %c0_4 = arith.constant 0 : index
    %c0_5 = arith.constant 0 : index
    %6 = vector.load %arg3[%c0_4, %c0_5] : memref<128x128xbf16, #tpu.memory_space<vmem>>, vector<128x128xbf16>
    %cst_6 = arith.constant dense<0.000000e+00> : vector<16x128xf32>
    %7 = tpu.matmul %5, %6, %cst_6 {dimension_numbers = #tpu.dot_dimension_numbers<[1], [0], [0], [1], [0, 0, 1, 1], [], []>} : vector<16x128xbf16>, vector<128x128xbf16>, vector<16x128xf32> -> vector<16x128xf32>
    %c0_7 = arith.constant 0 : index
    %c0_8 = arith.constant 0 : index
    %8 = vector.load %arg4[%c0_7, %c0_8] : memref<16x128xf32, #tpu.memory_space<vmem>>, vector<16x128xf32>
    tpu.vector_store %arg4[%c0_7, %c0_8], %7 {strides = array<i32>} : memref<16x128xf32, #tpu.memory_space<vmem>>, vector<16x128xf32>,
    return
  }
  func.func @transform_0(%arg0: i32) -> (i32, i32) {
    %c0_i32 = arith.constant 0 : i32
    %c0_i32_0 = arith.constant 0 : i32
    return %arg0, %c0_i32 : i32, i32
  }
  func.func @transform_1(%arg0: i32) -> (i32, i32) {
    %c0_i32 = arith.constant 0 : i32
    %c0_i32_0 = arith.constant 0 : i32
    %c0_i32_1 = arith.constant 0 : i32
    return %c0_i32, %c0_i32_0 : i32, i32
  }
  func.func @transform_2(%arg0: i32) -> (i32, i32) {
    %c0_i32 = arith.constant 0 : i32
    %c0_i32_0 = arith.constant 0 : i32
    %c0_i32_1 = arith.constant 0 : i32
    return %c0_i32, %c0_i32_0 : i32, i32
  }
  func.func @transform_3(%arg0: i32) -> (i32, i32) {
    %c0_i32 = arith.constant 0 : i32
    %c0_i32_0 = arith.constant 0 : i32
    return %arg0, %c0_i32 : i32, i32
  }
}

</mosaic_0001>

<bundles_post_ra>
// kernel: tpu_custom_call.1
= control target key start
LH: loop header
LB: loop body
LE: loop exit
PB: predicated region body
PF: predicated region fallthrough
CT: control target
= control target key end

     0   :  { %8 = vsyncpa [#allocation3], 0  ;;  %s486_s0 = inlined_call_operand.hbm [shape: bf16[16,128], index: 0, kind: input, shape index: {}]   ;;  %s487_s1 = inlined_call_operand.hbm [shape: bf16[128,128], index: 1, kind: input, shape index: {}]   ;;  %s488_s2 = inlined_call_operand.hbm [shape: bf16[128,128], index: 2, kind: input, shape index: {}]   ;;  %s489_s3 = inlined_call_operand.hbm [shape: f32[16,128], index: 3, kind: output, shape index: {}]  }
   0x1   :  { %9 = vsyncpa [#allocation6], 0 }
   0x2   :  { %10 = vsyncpa [#allocation4], 0  ;;  %s28_s14 = sshll.u32 %s487_s1, 4  ;;  %s446_s15 = smov [#allocation5]   ;;  %s29_s14 = int_to_ptr.hbm [resolvable:$true] %s28_s14 }
   0x3   :  { %s30_s16 = sshll.u32 %s446_s15, 4  ;;  %s15_s19 = sshll.u32 %s486_s0, 4  ;;  %s31_s16 = int_to_ptr.vmem [resolvable:$true] %s30_s16  ;;  %s16_s19 = int_to_ptr.hbm [resolvable:$true] %s15_s19 }
   0x4   :  { %s447_s20 = smov 64   ;;  %s448_s21 = smov 4  }
   0x5   :  { %36 = dma.hbm_to_vmem [thread:$0]  %s29_s14, 1024, %s31_s16, [#allocation6], %s447_s20, %s447_s20, %s448_s21  }
   0x6   :  { %s449_s22 = smov [#allocation2]   ;;  %s41_s26 = sshll.u32 %s488_s2, 4  ;;  %s42_s26 = int_to_ptr.hbm [resolvable:$true] %s41_s26 }
   0x7   :  { %s17_s23 = sshll.u32 %s449_s22, 4  ;;  %s450_s1 = smov [#allocation7]   ;;  %s18_s23 = int_to_ptr.vmem [resolvable:$true] %s17_s23 }
   0x8   :  { %23 = dma.hbm_to_vmem [thread:$0]  %s16_s19, 128, %s18_s23, [#allocation3], %s447_s20, %s447_s20, %s448_s21  }
   0x9   :  { %s43_s27 = sshll.u32 %s450_s1, 4  ;;  %s44_s27 = int_to_ptr.vmem [resolvable:$true] %s43_s27 }
   0xa   :  { %49 = dma.hbm_to_vmem [thread:$0]  %s42_s26, 1024, %s44_s27, [#allocation6], %s447_s20, %s447_s20, %s448_s21  }
   0xb   :  { %440 = dma.done.wait [#allocation3], 128  }
   0xc   :  { %441 = vsyncadd [#allocation3], 4294967168 }
   0xd   :  { %442 = dma.done.wait [#allocation6], 2048  }
   0xe   :  { %443 = vsyncadd [#allocation6], 4294965248  ;;  %v327_v0 = vld [vmem:[#allocation5 + $0x38] sm:$0xff]  ;;  %v326_v1 = vld [vmem:[#allocation5 + $0x30] sm:$0xff]  ;;  %s451_s0 = smov [#allocation8]   ;;  %s237_s30 = sshll.u32 %s489_s3, 4  ;;  %s238_s30 = int_to_ptr.hbm [resolvable:$true] %s237_s30 }
   0xf   :  { %134 = vmatpush.bf16.msra.mxu0 %v327_v0  ;;  %v335_v2 = vld [vmem:[#allocation7 + $0x38] sm:$0xff]  ;;  %v334_v3 = vld [vmem:[#allocation7 + $0x30] sm:$0xff]  ;;  %v325_v4 = vld [vmem:[#allocation5 + $0x28] sm:$0xff]  ;;  %s235_s2 = sshll.u32 %s451_s0, 4  ;;  %s452_s4 = smov 128   ;;  %s236_s2 = int_to_ptr.vmem [resolvable:$true] %s235_s2 }
  0x10   :  { %215 = vmatpush.bf16.msra.mxu1 %v335_v2  ;;  %v333_v5 = vld [vmem:[#allocation7 + $0x28] sm:$0xff]  ;;  %v324_v6 = vld [vmem:[#allocation5 + $0x20] sm:$0xff]  ;;  %v323_v8 = vld [vmem:[#allocation5 + $0x18] sm:$0xff]  ;;  %s453_s5 = smov 8  }
  0x11   :  { %v332_v7 = vld [vmem:[#allocation7 + $0x20] sm:$0xff]  ;;  %v331_v9 = vld [vmem:[#allocation7 + $0x18] sm:$0xff]  ;;  %v322_v10 = vld [vmem:[#allocation5 + $0x10] sm:$0xff] }
  0x12   :  { %v321_v11 = vld [vmem:[#allocation5 + $0x8] sm:$0xff]  ;;  %v320_v12 = vld [vmem:[#allocation5] sm:$0xff]  ;;  %v319_v13 = vld [vmem:[#allocation2] sm:$0xff] }
  0x13   :  { %135 = vmatpush.bf16.msra.mxu0 %v326_v1  ;;  %v330_v14 = vld [vmem:[#allocation7 + $0x10] sm:$0xff]  ;;  %v329_v15 = vld [vmem:[#allocation7 + $0x8] sm:$0xff]  ;;  %v328_v16 = vld [vmem:[#allocation7] sm:$0xff] }
  0x14   :  { %216 = vmatpush.bf16.msra.mxu1 %v334_v3 }
  0x17   :  { %136 = vmatpush.bf16.msra.mxu0 %v325_v4 }
  0x18   :  { %217 = vmatpush.bf16.msra.mxu1 %v333_v5 }
  0x1b   :  { %137 = vmatpush.bf16.msra.mxu0 %v324_v6 }
  0x1c   :  { %218 = vmatpush.bf16.msra.mxu1 %v332_v7 }
  0x1f   :  { %138 = vmatpush.bf16.msra.mxu0 %v323_v8 }
  0x20   :  { %219 = vmatpush.bf16.msra.mxu1 %v331_v9 }
  0x23   :  { %139 = vmatpush.bf16.msra.mxu0 %v322_v10 }
  0x24   :  { %220 = vmatpush.bf16.msra.mxu1 %v330_v14 }
  0x27   :  { %140 = vmatpush.bf16.msra.mxu0 %v321_v11 }
  0x28   :  { %221 = vmatpush.bf16.msra.mxu1 %v329_v15 }
  0x2b   :  { %141 = vmatpush.bf16.msra.mxu0 %v320_v12 }
  0x2c   :  { %222 = vmatpush.bf16.msra.mxu1 %v328_v16 }
  0x2e   :  { %142 = vmatmul.bf16.vlgmr.msra.gmra.mxu0 %v319_v13 }
  0xab   :  { %v143_v17 = vpop.f32.mrf.mxu0 }
  0xac   :  { %v148_v19 = vmax.f32 %v143_v17, 0.0 }
  0xb3   :  { %v145_v18 = vpop.f32.mrf.mxu0 }
  0xb4   :  { %v149_v20 = vmax.f32 %v145_v18, 0.0 }
  0xb6   :  { %v150_v21 = vpack.c.bf16 %v149_v20, %v148_v19 }
  0xb8   :  { %223 = vmatmul.bf16.vlgmr.msra.gmra.mxu1 %v150_v21 }
 0x135   :  { %v224_v22 = vpop.f32.mrf.mxu1 }
 0x136   :  { %229 = vst [vmem:[#allocation8] sm:$0xff] %v224_v22 }
 0x13d   :  { %v226_v23 = vpop.f32.mrf.mxu1 }
 0x13e   :  { %230 = vst [vmem:[#allocation8 + $0x8] sm:$0xff] %v226_v23 }
 0x13f   :  { %243 = dma.vmem_to_hbm [thread:$0]  %s236_s2, 256, %s238_s30, [#allocation4], %s452_s4, %s452_s4, %s453_s5  }
 0x140   :  { %444 = dma.done.wait [#allocation4], 256  }
 0x141   :  { %445 = vsyncadd [#allocation4], 4294967040 }
 0x142   :  { %248 = vsyncpa [#allocation3], 1 }
 0x143   :  { %249 = vsyncpa [#allocation6], 1 }
 0x144   :  { %250 = vsyncpa [#allocation4], 1 }

</bundles_post_ra>
